<compile_context>
chip_gen: v7x
topology: tpu7x:2x2x1
jax: 0.10.0
libtpu: 0.0.40
codegen_flags: <defaults>
</compile_context>

<pallas_src>
import functools

import jax
import jax.numpy as jnp
from jax.experimental import pallas as pl
from jax.experimental.pallas import tpu as pltpu


def _attention_score_kernel(qproj_ref, keys_ref, wr_t_ref, vt_ref, out_ref,
                            *, apply_softmax):
    # qproj_ref: [1, H]       W_query @ query + b_query (precomputed, resident)
    # keys_ref:  [TILE_N, H]  keys tile for this grid step
    # wr_t_ref:  [H, H]       W_ref transposed (resident)
    # vt_ref:    [1, H]       V transposed (resident)
    # out_ref:   [1, TILE_N]  lane-dense scores for this tile
    k_proj = jnp.dot(keys_ref[...], wr_t_ref[...],
                     preferred_element_type=jnp.float32)          # [TILE_N, H]
    m = jnp.tanh(k_proj + qproj_ref[...])                         # [TILE_N, H]
    # score[0, n] = sum_h vt[0, h] * m[n, h]  -> lane-dense [1, TILE_N]
    score = jax.lax.dot_general(
        vt_ref[...], m,
        dimension_numbers=(((1,), (1,)), ((), ())),
        preferred_element_type=jnp.float32)                       # [1, TILE_N]
    if apply_softmax:
        # Entire N axis lives in this single tile -> global softmax over lanes.
        s_max = jnp.max(score, axis=-1, keepdims=True)            # [1, 1]
        e = jnp.exp(score - s_max)                                # [1, TILE_N]
        score = e / jnp.sum(e, axis=-1, keepdims=True)            # [1, TILE_N]
    out_ref[...] = score.astype(out_ref.dtype)


def attention_score(query, keys, w_query, b_query, w_ref, v,
                    use_softmax=False, keys_dtype=None):
    """query: [Q], keys: [N, H], w_query: [H, Q], b_query: [H],
    w_ref: [H, H], v: [H, 1] -> [N, 1] (float32).

    keys_dtype: optional compute dtype for keys / W_ref (e.g. jnp.bfloat16 to
    halve HBM traffic); default keeps the input dtype for exact parity with
    the torch module.
    """
    N, H = keys.shape

    # Hoist the query projection (constant across all N tiles).
    q_proj = (w_query.astype(jnp.float32) @ query.astype(jnp.float32)
              + b_query.astype(jnp.float32)).reshape(1, H)        # [1, H]
    v_t = jnp.transpose(v).astype(jnp.float32)                    # [1, H]

    compute_dtype = keys_dtype if keys_dtype is not None else keys.dtype
    keys_in = keys.astype(compute_dtype)                          # [N, H]
    wr_t = jnp.transpose(w_ref).astype(compute_dtype)             # [H, H]

    # Tiling over the item axis.
    #   N <= 4096  : one full block (also avoids the (8,128) divisibility
    #                requirement for odd N) -> softmax can be fused in-kernel.
    #   N  > 4096  : 2048-row tiles; keys tile is 2048 x 128(lane-padded) x 4B
    #                = 1 MiB, double-buffered -> ~2 MiB of VMEM.
    single_block_max = 4096
    tile_n = N if N <= single_block_max else 2048
    num_tiles = pl.cdiv(N, tile_n)
    fuse_softmax = bool(use_softmax) and num_tiles == 1

    kernel = functools.partial(_attention_score_kernel,
                               apply_softmax=fuse_softmax)

    out_row = pl.pallas_call(
        kernel,
        out_shape=jax.ShapeDtypeStruct((1, N), jnp.float32),
        grid=(num_tiles,),
        in_specs=[
            pl.BlockSpec((1, H), lambda i: (0, 0)),        # q_proj (resident)
            pl.BlockSpec((tile_n, H), lambda i: (i, 0)),   # keys (tiled over N)
            pl.BlockSpec((H, H), lambda i: (0, 0)),        # W_ref^T (resident)
            pl.BlockSpec((1, H), lambda i: (0, 0)),        # V^T (resident)
        ],
        out_specs=pl.BlockSpec((1, tile_n), lambda i: (0, i)),
        compiler_params=pltpu.CompilerParams(
            dimension_semantics=("parallel",),
            vmem_limit_bytes=32 * 1024 * 1024,
        ),
    )(q_proj, keys_in, wr_t, v_t)

    score = out_row.reshape(N, 1)
    if use_softmax and not fuse_softmax:
        # Global softmax over all N items when N is split across grid tiles;
        # done on the tiny [N,1] output so it stays correct.
        score = jax.nn.softmax(score, axis=0)
    return score


def attention_score_ref(query, keys, w_query, b_query, w_ref, v,
                        use_softmax=False):
    """Plain-JAX reference mirroring the PyTorch forward."""
    q_proj = w_query @ query + b_query                     # [H]
    k_proj = keys @ w_ref.T                                # [N, H]
    m = jnp.tanh(q_proj[None, :] + k_proj)                 # [N, H]
    score = m @ v                                          # [N, 1]
    if use_softmax:
        score = jax.nn.softmax(score, axis=0)
    return score


if __name__ == "__main__":
    hidden_size = 32
    query_size = 16
    num_items = 8

    key = jax.random.PRNGKey(0)
    k_q, k_keys, k_wq, k_bq, k_wr, k_v, k_big, k_huge = jax.random.split(key, 8)

    # Deterministic synthetic parameters (shapes per the module __init__).
    w_query = jax.random.normal(k_wq, (hidden_size, query_size), jnp.float32) * 0.1
    b_query = jax.random.normal(k_bq, (hidden_size,), jnp.float32) * 0.1
    w_ref = jax.random.normal(k_wr, (hidden_size, hidden_size), jnp.float32) * 0.1
    v = jax.random.normal(k_v, (hidden_size, 1), jnp.float32) * 1e-4

    # Inputs.
    query = jax.random.normal(k_q, (query_size,), jnp.float32)
    keys = jax.random.normal(k_keys, (num_items, hidden_size), jnp.float32)

    # Small case (single block, no softmax).
    out = jax.block_until_ready(
        attention_score(query, keys, w_query, b_query, w_ref, v,
                        use_softmax=False))
    ref = attention_score_ref(query, keys, w_query, b_query, w_ref, v,
                              use_softmax=False)
    assert out.shape == (num_items, 1)
    assert jnp.allclose(out, ref, atol=1e-5, rtol=1e-5)

    # Small case, softmax fused in-kernel (single tile).
    out_sm = jax.block_until_ready(
        attention_score(query, keys, w_query, b_query, w_ref, v,
                        use_softmax=True))
    ref_sm = attention_score_ref(query, keys, w_query, b_query, w_ref, v,
                                 use_softmax=True)
    assert jnp.allclose(out_sm, ref_sm, atol=1e-5, rtol=1e-5)

    # Larger N, still a single block (fused softmax path, N = 4096).
    big_n = 4096
    keys_big = jax.random.normal(k_big, (big_n, hidden_size), jnp.float32)
    out_big = jax.block_until_ready(
        attention_score(query, keys_big, w_query, b_query, w_ref, v,
                        use_softmax=True))
    ref_big = attention_score_ref(query, keys_big, w_query, b_query, w_ref, v,
                                  use_softmax=True)
    assert out_big.shape == (big_n, 1)
    assert jnp.allclose(out_big, ref_big, atol=1e-5, rtol=1e-5)

    # Even larger N to exercise the multi-tile path (3 x 2048 tiles,
    # softmax applied in the wrapper over the full N axis).
    huge_n = 6144
    keys_huge = jax.random.normal(k_huge, (huge_n, hidden_size), jnp.float32)
    out_huge = jax.block_until_ready(
        attention_score(query, keys_huge, w_query, b_query, w_ref, v,
                        use_softmax=True))
    ref_huge = attention_score_ref(query, keys_huge, w_query, b_query, w_ref, v,
                                   use_softmax=True)
    assert out_huge.shape == (huge_n, 1)
    assert jnp.allclose(out_huge, ref_huge, atol=1e-5, rtol=1e-5)

    print("KERNEL_OK")
</pallas_src>

<mosaic_0001>
module attributes {stable_mosaic.version = 11 : i64} {
  func.func @_attention_score_kernel(%arg0: i32, %arg1: memref<1x32xf32, #tpu.memory_space<vmem>>, %arg2: memref<8x32xf32, #tpu.memory_space<vmem>>, %arg3: memref<32x32xf32, #tpu.memory_space<vmem>>, %arg4: memref<1x32xf32, #tpu.memory_space<vmem>>, %arg5: memref<1x8xf32, #tpu.memory_space<vmem>>) attributes {dimension_semantics = [#tpu.dimension_semantics<parallel>], iteration_bounds = array<i64: 1>, scalar_prefetch = 0 : i64, scratch_operands = 0 : i64, tpu.core_type = #tpu.core_type<tc>, window_params = [{pipeline_mode = #tpu.pipeline_mode<synchronous>, transform_indices = @transform_0, window_bounds = array<i64: 1, 32>}, {transform_indices = @transform_1, window_bounds = array<i64: 8, 32>}, {pipeline_mode = #tpu.pipeline_mode<synchronous>, transform_indices = @transform_2, window_bounds = array<i64: 32, 32>}, {pipeline_mode = #tpu.pipeline_mode<synchronous>, transform_indices = @transform_3, window_bounds = array<i64: 1, 32>}, {transform_indices = @transform_4, window_bounds = array<i64: 1, 8>}]} {
    %c0 = arith.constant 0 : index
    %c0_0 = arith.constant 0 : index
    %0 = vector.load %arg2[%c0, %c0_0] : memref<8x32xf32, #tpu.memory_space<vmem>>, vector<8x32xf32>
    %c0_1 = arith.constant 0 : index
    %c0_2 = arith.constant 0 : index
    %1 = vector.load %arg3[%c0_1, %c0_2] : memref<32x32xf32, #tpu.memory_space<vmem>>, vector<32x32xf32>
    %cst = arith.constant dense<0.000000e+00> : vector<8x32xf32>
    %2 = tpu.matmul %0, %1, %cst {dimension_numbers = #tpu.dot_dimension_numbers<[1], [0], [0], [1], [0, 0, 1, 1], [], []>} : vector<8x32xf32>, vector<32x32xf32>, vector<8x32xf32> -> vector<8x32xf32>
    %c0_3 = arith.constant 0 : index
    %c0_4 = arith.constant 0 : index
    %3 = vector.load %arg1[%c0_3, %c0_4] : memref<1x32xf32, #tpu.memory_space<vmem>>, vector<1x32xf32>
    %4 = vector.broadcast %3 : vector<1x32xf32> to vector<8x32xf32>
    %5 = arith.addf %2, %4 : vector<8x32xf32>
    %6 = math.tanh %5 : vector<8x32xf32>
    %c0_5 = arith.constant 0 : index
    %c0_6 = arith.constant 0 : index
    %7 = vector.load %arg4[%c0_5, %c0_6] : memref<1x32xf32, #tpu.memory_space<vmem>>, vector<1x32xf32>
    %cst_7 = arith.constant dense<0.000000e+00> : vector<1x8xf32>
    %8 = tpu.matmul %7, %6, %cst_7 {dimension_numbers = #tpu.dot_dimension_numbers<[1], [1], [0], [0], [0, 0, 1, 0], [], []>} : vector<1x32xf32>, vector<8x32xf32>, vector<1x8xf32> -> vector<1x8xf32>
    %c0_8 = arith.constant 0 : index
    %c0_9 = arith.constant 0 : index
    %9 = vector.load %arg5[%c0_8, %c0_9] : memref<1x8xf32, #tpu.memory_space<vmem>>, vector<1x8xf32>
    tpu.vector_store %arg5[%c0_8, %c0_9], %8 {strides = array<i32>} : memref<1x8xf32, #tpu.memory_space<vmem>>, vector<1x8xf32>,
    return
  }
  func.func @transform_0(%arg0: i32) -> (i32, i32) {
    %c0_i32 = arith.constant 0 : i32
    %c0_i32_0 = arith.constant 0 : i32
    %c0_i32_1 = arith.constant 0 : i32
    return %c0_i32, %c0_i32_0 : i32, i32
  }
  func.func @transform_1(%arg0: i32) -> (i32, i32) {
    %c0_i32 = arith.constant 0 : i32
    %c0_i32_0 = arith.constant 0 : i32
    return %arg0, %c0_i32 : i32, i32
  }
  func.func @transform_2(%arg0: i32) -> (i32, i32) {
    %c0_i32 = arith.constant 0 : i32
    %c0_i32_0 = arith.constant 0 : i32
    %c0_i32_1 = arith.constant 0 : i32
    return %c0_i32, %c0_i32_0 : i32, i32
  }
  func.func @transform_3(%arg0: i32) -> (i32, i32) {
    %c0_i32 = arith.constant 0 : i32
    %c0_i32_0 = arith.constant 0 : i32
    %c0_i32_1 = arith.constant 0 : i32
    return %c0_i32, %c0_i32_0 : i32, i32
  }
  func.func @transform_4(%arg0: i32) -> (i32, i32) {
    %c0_i32 = arith.constant 0 : i32
    %c0_i32_0 = arith.constant 0 : i32
    return %c0_i32, %arg0 : i32, i32
  }
}

</mosaic_0001>

<bundles_post_ra>
// kernel: tpu_custom_call.1
= control target key start
LH: loop header
LB: loop body
LE: loop exit
PB: predicated region body
PF: predicated region fallthrough
CT: control target
= control target key end

     0   :  { %9 = vsyncpa [#allocation3], 0  ;;  %s460_s0 = inlined_call_operand.hbm [shape: f32[1,32], index: 0, kind: input, shape index: {}]   ;;  %s461_s1 = inlined_call_operand.hbm [shape: f32[8,32], index: 1, kind: input, shape index: {}]   ;;  %s462_s2 = inlined_call_operand.hbm [shape: f32[32,32], index: 2, kind: input, shape index: {}]   ;;  %s463_s3 = inlined_call_operand.vmem [shape: f32[1,32], index: 3, kind: input, shape index: {}]   ;;  %s464_s4 = inlined_call_operand.hbm [shape: f32[1,8], index: 4, kind: output, shape index: {}]  }
   0x1   :  { %10 = vsyncpa [#allocation6], 0 }
   0x2   :  { %11 = vsyncpa [#allocation4], 0  ;;  %s375_s15 = smov [#allocation5]   ;;  %s376_s17 = smov [#allocation2]  }
   0x3   :  { %s28_s16 = sshll.u32 %s375_s15, 4  ;;  %s18_s18 = sshll.u32 %s376_s17, 4  ;;  %s29_s16 = int_to_ptr.vmem [resolvable:$true] %s28_s16  ;;  %s19_s18 = int_to_ptr.vmem [resolvable:$true] %s18_s18 }
   0x4   :  { %s281_s21 = scalar_lea.hbm %s461_s1, 128 }
   0x5   :  { %p282_p0 = scmp.ne.s32.totalorder %s461_s1, %s281_s21  ;;  %p285_p1 = scmp.lt.u32.totalorder %s281_s21, %s461_s1 }
   0x7   :  { %p287_p2 = pnand %p285_p1, %p282_p0 }
   0x9   :  { %290 = shalt.err (!%p287_p2)
}
   0xa   :  { %s291_s26 = scalar_lea.vmem %s29_s16, 128  ;;  %p296_p4 = scmp.lt.s32.totalorder %s29_s16, %s29_s16 }
   0xb   :  { %p292_p3 = scmp.ne.s32.totalorder %s29_s16, %s291_s26  ;;  %p297_p5 = scmp.lt.s32.totalorder %s291_s26, %s291_s26 }
   0xd   :  { %p298_p6 = por %p297_p5, %p296_p4 }
   0xf   :  { %p299_p7 = pnand %p298_p6, %p292_p3 }
  0x11   :  { %302 = shalt.err (!%p299_p7)
}
  0x12   :  { %31 = dma.hbm_to_vmem [thread:$0]  %s461_s1, 128, %s29_s16, [#allocation6]  }
  0x13   :  { %s303_s5 = scalar_lea.hbm %s460_s0, 16 }
  0x14   :  { %p304_p8 = scmp.ne.s32.totalorder %s460_s0, %s303_s5  ;;  %p307_p9 = scmp.lt.u32.totalorder %s303_s5, %s460_s0 }
  0x16   :  { %p309_p10 = pnand %p307_p9, %p304_p8 }
  0x18   :  { %312 = shalt.err (!%p309_p10)
}
  0x19   :  { %s313_s10 = scalar_lea.vmem %s19_s18, 16  ;;  %s317_s11 = scalar_lea.vmem %s19_s18, 32 }
  0x1a   :  { %p314_p11 = scmp.ne.s32.totalorder %s19_s18, %s313_s10  ;;  %p318_p12 = scmp.lt.s32.totalorder %s19_s18, %s19_s18 }
  0x1b   :  { %p319_p13 = scmp.lt.s32.totalorder %s317_s11, %s313_s10 }
  0x1d   :  { %p320_p0 = por %p319_p13, %p318_p12 }
  0x1f   :  { %p321_p1 = pnand %p320_p0, %p314_p11 }
  0x21   :  { %324 = shalt.err (!%p321_p1)
}
  0x22   :  { %21 = dma.hbm_to_vmem [thread:$0]  %s460_s0, 16, %s19_s18, [#allocation3]  }
  0x23   :  { %s377_s13 = smov [#allocation7]   ;;  %s325_s17 = scalar_lea.hbm %s462_s2, 512 }
  0x24   :  { %s37_s14 = sshll.u32 %s377_s13, 4  ;;  %p326_p2 = scmp.ne.s32.totalorder %s462_s2, %s325_s17  ;;  %s38_s14 = int_to_ptr.vmem [resolvable:$true] %s37_s14 }
  0x25   :  { %p329_p3 = scmp.lt.u32.totalorder %s325_s17, %s462_s2 }
  0x27   :  { %p331_p4 = pnand %p329_p3, %p326_p2 }
  0x29   :  { %334 = shalt.err (!%p331_p4)
}
  0x2a   :  { %s335_s23 = scalar_lea.vmem %s38_s14, 512  ;;  %p340_p6 = scmp.lt.s32.totalorder %s38_s14, %s38_s14 }
  0x2b   :  { %p336_p5 = scmp.ne.s32.totalorder %s38_s14, %s335_s23  ;;  %p341_p7 = scmp.lt.s32.totalorder %s335_s23, %s335_s23 }
  0x2d   :  { %p342_p8 = por %p341_p7, %p340_p6 }
  0x2f   :  { %p343_p9 = pnand %p342_p8, %p336_p5 }
  0x31   :  { %346 = shalt.err (!%p343_p9)
}
  0x32   :  { %s378_s0 = smov 128   ;;  %s379_s18 = smov 8  }
  0x33   :  { %43 = dma.hbm_to_vmem [thread:$0]  %s462_s2, 512, %s38_s14, [#allocation6], %s378_s0, %s378_s0, %s379_s18  }
  0x34   :  { %369 = dma.done.wait [#allocation3], 16  }
  0x35   :  { %370 = vsyncadd [#allocation3], 4294967280 }
  0x36   :  { %371 = dma.done.wait [#allocation6], 640  }
  0x37   :  { %372 = vsyncadd [#allocation6], 4294966656  ;;  %v380_v0 = vmov 0.0|0.0   ;;  %vm381_vm0 = vmmov 0   ;;  %v382_v1 = vmov 0.0   ;;  %v56_v2 = vld [vmem:[#allocation7] sm:$0xff] }
  0x38   :  { %264 = vmatprep.subr.bf16.mxu0 %v380_v0  ;;  %256 = vmatprep.mubr.msk.f32.mxu0 %vm381_vm0, %v382_v1  ;;  %v57_v3 = vld [vmem:[#allocation7 + $0x8] sm:$0xff]  ;;  %v58_v4 = vld [vmem:[#allocation7 + $0x10] sm:$0xff]  ;;  %v59_v6 = vld [vmem:[#allocation7 + $0x18] sm:$0xff]  ;;  %vm67_vm1 = vcmask 261120   ;;  %s383_s27 = smov [#allocation8]   ;;  %vm219_vm2 = vcmask 57344  }
  0x39   :  { %259 = vmatprep.subr.mxu1 %v382_v1  ;;  %261 = vmatprep.mubr.msk.f32.mxu1 %vm381_vm0, %v382_v1  ;;  %v265_v5 = vpack.c.bf16 %v57_v3, %v56_v2  ;;  %v268_v7 = vpack.c.bf16 %v59_v6, %v58_v4  ;;  %v55_v8 = vld [vmem:[#allocation5] sm:$0xff]  ;;  %v237_v9 = vld [vmem:[#allocation2] ss:$0 sm:$0xff]  ;;  %s227_s28 = sshll.u32 %s383_s27, 4  ;;  %s228_s28 = int_to_ptr.vmem [resolvable:$true] %s227_s28 }
  0x3a   :  { %v142_v14 = vld [vmem:[%s463_s3] sm:$0x1]  ;;  %s347_s29 = scalar_lea.vmem %s228_s28, 16  ;;  %s351_s30 = scalar_lea.vmem %s228_s28, 32 }
  0x3b   :  { %266 = vmatpush3.bf16.msra.mxu0 %v265_v5  ;;  %p348_p10 = scmp.ne.s32.totalorder %s228_s28, %s347_s29  ;;  %p352_p11 = scmp.lt.s32.totalorder %s228_s28, %s228_s28 }
  0x3c   :  { %267 = vmatprep.subr.bf16.mxu0 %v380_v0  ;;  %p353_p12 = scmp.lt.s32.totalorder %s351_s30, %s347_s29 }
  0x3e   :  { %p354_p13 = por %p353_p12, %p352_p11 }
  0x3f   :  { %269 = vmatpush3.bf16.msra.mxu0 %v268_v7 }
  0x40   :  { %p355_p0 = pnand %p354_p13, %p348_p10 }
  0x42   :  { %257 = vmatmul.mubr.msk.f32.vlgmr.msra.gmra.mrb[0].mxu0 %vm67_vm1, %v55_v8 }
 0x115   :  { %v137_v10 = vpop.f32.mrb[0].mxu0 }
 0x116   :  { %v138_v11 = vadd.f32 %v237_v9, %v137_v10  ;;  %v258_v12 = vpop.f32.mrb[1].mxu0 }
 0x118   :  { %279 = vtanh.f32 %v138_v11 }
 0x122   :  { %v280_v13 = vpop.eup %279 }
 0x123   :  { %260 = vmatpush3.xpose.msk.msra.mxu1 %vm67_vm1, %v280_v13 }
 0x126   :  { %262 = vmatmul.mubr.msk.f32.vlgmr.msra.gmra.mrb[0].mxu1 %vm67_vm1, %v142_v14 }
 0x1f9   :  { %v215_v15 = vpop.f32.mrb[0].mxu1 }
 0x1fa   :  { %v263_v16 = vpop.f32.mrb[1].mxu1  ;;  %220 = vst.msk [vmem:[#allocation8] sm:$0x1] %vm219_vm2, %v215_v15 }
 0x1fb   :  { %358 = shalt.err (!%p355_p0)
}
 0x1fc   :  { %s359_s3 = scalar_lea.hbm %s464_s4, 16 }
 0x1fd   :  { %p360_p1 = scmp.ne.s32.totalorder %s464_s4, %s359_s3  ;;  %p363_p2 = scmp.lt.u32.totalorder %s359_s3, %s464_s4 }
 0x1ff   :  { %p365_p3 = pnand %p363_p2, %p360_p1 }
 0x201   :  { %368 = shalt.err (!%p365_p3)
}
 0x202   :  { %230 = dma.vmem_to_hbm [thread:$0]  %s228_s28, 16, %s464_s4, [#allocation4]  }
 0x203   :  { %373 = dma.done.wait [#allocation4], 16  }
 0x204   :  { %374 = vsyncadd [#allocation4], 4294967280 }
 0x205   :  { %234 = vsyncpa [#allocation3], 1 }
 0x206   :  { %235 = vsyncpa [#allocation6], 1 }
 0x207   :  { %236 = vsyncpa [#allocation4], 1 }

</bundles_post_ra>
